<compile_context>
chip_gen: v7x
topology: tpu7x:2x2x1
jax: 0.10.0
libtpu: 0.0.40
codegen_flags: <defaults>
</compile_context>

<pallas_src>
import jax
import jax.numpy as jnp
from jax.experimental import pallas as pl
from jax.experimental.pallas import tpu as pltpu

EPS = 1e-5


def _one_module_kernel(xp_ref, b1_ref, b2_ref, s_ref, st_ref, gb1_ref, gb2_ref,
                       out_ref, ybuf_ref):
    # xp_ref   : (N, H+2, K1)        bf16  vertically padded input, (W, C1) lane-packed,
    #                                       lane axis zero-padded up to K1 (>= W*C1)
    # b1_ref   : (3*K1, W*C2)        bf16  conv1 stacked block-Toeplitz taps (no-halo)
    # b2_ref   : (3*W*C2, W*C2)      bf16  conv2 stacked block-Toeplitz taps (no-halo)
    # s_ref    : (W*C2, C2)          f32   lane -> channel selector (0/1)
    # st_ref   : (C2, W*C2)          f32   channel -> lane broadcaster (0/1)
    # gb*_ref  : (2, C2)             f32   BN affine params, row0 = gamma, row1 = beta
    # out_ref  : (N, H, W*C2)              lane-dense packed output
    # ybuf_ref : (N, H+2, W*C2)      bf16  vertical-only re-pad scratch (lane-dense)
    N, H, WC2 = out_ref.shape
    C2 = gb1_ref.shape[1]
    K1 = xp_ref.shape[2]
    NH = N * H
    inv_nhw = 1.0 / float(NH * (WC2 // C2))

    def bn_relu(acc, gb_ref):
        # Fused training-mode BN + ReLU.  One-pass sum / sum-of-squares stats
        # (fine at these sizes; switch to two-pass before scaling NHW).
        # Per-channel reduce/broadcast across the packed lane axis goes through
        # two small constant-selector matmuls (MXU; no cross-lane relayouts).
        col_sum = jnp.sum(acc, axis=0, keepdims=True)               # (1, W*C2)
        col_sq = jnp.sum(acc * acc, axis=0, keepdims=True)          # (1, W*C2)
        stats = jnp.concatenate([col_sum, col_sq], axis=0)          # (2, W*C2)
        ch = jnp.dot(stats, s_ref[...],
                     preferred_element_type=jnp.float32)            # (2, C2)
        mean = ch[0:1] * inv_nhw
        var = ch[1:2] * inv_nhw - mean * mean
        gb = gb_ref[...]
        scale_c = gb[0:1] * jax.lax.rsqrt(var + EPS)                # (1, C2)
        shift_c = gb[1:2] - mean * scale_c                          # (1, C2)
        ss = jnp.concatenate([scale_c, shift_c], axis=0)            # (2, C2)
        lane = jnp.dot(ss, st_ref[...],
                       preferred_element_type=jnp.float32)          # (2, W*C2)
        return jnp.maximum(acc * lane[0:1] + lane[1:2], 0.0)

    # ---- conv1: one MXU matmul over the 3 ky taps stacked on the K axis ----
    xcat = jnp.concatenate(
        [xp_ref[:, dy:dy + H, :].reshape(NH, K1) for dy in range(3)], axis=-1)
    acc1 = jnp.dot(xcat, b1_ref[...], preferred_element_type=jnp.float32)  # (NH, W*C2)
    y1 = bn_relu(acc1, gb1_ref)                                     # (NH, W*C2) f32

    # ---- vertical re-pad of the intermediate: 3 full-lane-width bf16 stores ----
    ybuf_ref[:, 0:1, :] = jnp.zeros((N, 1, WC2), jnp.bfloat16)          # top halo row
    ybuf_ref[:, H + 1:H + 2, :] = jnp.zeros((N, 1, WC2), jnp.bfloat16)  # bottom halo row
    ybuf_ref[:, 1:H + 1, :] = y1.reshape(N, H, WC2).astype(jnp.bfloat16)

    # ---- conv2: one MXU matmul over the 3 ky taps stacked on the K axis ----
    ycat = jnp.concatenate(
        [ybuf_ref[:, dy:dy + H, :].reshape(NH, WC2) for dy in range(3)], axis=-1)
    acc2 = jnp.dot(ycat, b2_ref[...], preferred_element_type=jnp.float32)
    y2 = bn_relu(acc2, gb2_ref)

    out_ref[...] = y2.reshape(N, H, WC2).astype(out_ref.dtype)      # dense 128-lane stores


def _make_taps(wt, w, k_pad=None):
    """Torch conv weight (Cout, Cin, 3, 3) -> (3*k_pad, w*Cout) stacked block-Toeplitz taps
    with the horizontal zero-padding folded in (no-halo):
      B[dy*k_pad + w_in*Cin + ci, w_out*Cout + co] = wt[co, ci, dy, dx],  w_in = w_out + dx - 1,
    rows with w_in outside [0, w) are simply absent (zero contribution).  Per-tap K is
    zero-padded from w*Cin up to k_pad so the kernel-side slab loads stay lane-dense."""
    cout, cin, kh, kw = wt.shape
    k = w * cin
    k_pad = k if k_pad is None else k_pad
    taps = []
    for dy in range(kh):
        b = jnp.zeros((k, w * cout), wt.dtype)
        for dx in range(kw):
            shift = jnp.eye(w, w, k=1 - dx, dtype=wt.dtype)   # ones at (w_out+dx-1, w_out)
            b = b + jnp.kron(shift, wt[:, :, dy, dx].T)
        if k_pad > k:
            b = jnp.pad(b, ((0, k_pad - k), (0, 0)))
        taps.append(b)
    return jnp.concatenate(taps, axis=0)                      # (3*k_pad, w*Cout)


def one_module_forward(x_nchw, w1, w2, g1, b1, g2, b2):
    """x_nchw: (N, C1, H, W) like PyTorch. Returns (N, C2, H, W)."""
    N, C1, H, W = x_nchw.shape
    C2 = w1.shape[0]
    WC2 = W * C2
    # Conv1 lane-packed K, padded up to a multiple of 128 for unmasked vreg loads.
    K1 = -(-(W * C1) // 128) * 128

    # Wrapper-side layout plumbing: NHWC, pack (W, C1) onto lanes, pad lanes to K1,
    # vertical pad of 1 row top/bottom (horizontal pad lives in the Toeplitz weights).
    x = jnp.transpose(x_nchw, (0, 2, 3, 1)).reshape(N, H, W * C1)
    xp = jnp.pad(x, ((0, 0), (1, 1), (0, K1 - W * C1))).astype(jnp.bfloat16)

    # NOTE: for inference with static weights, hoist these tap constructions out of the
    # per-call path (they are pure layout transforms of the conv weights).
    b1k = _make_taps(w1, W, k_pad=K1).astype(jnp.bfloat16)     # (3*K1, W*C2)
    b2k = _make_taps(w2, W, k_pad=WC2).astype(jnp.bfloat16)    # (3*W*C2, W*C2)

    sel = jnp.tile(jnp.eye(C2, dtype=jnp.float32), (W, 1))     # (W*C2, C2)
    selT = sel.T                                               # (C2, W*C2)
    gb1 = jnp.stack([g1, b1]).astype(jnp.float32)              # (2, C2)
    gb2 = jnp.stack([g2, b2]).astype(jnp.float32)              # (2, C2)

    out_packed = pl.pallas_call(
        _one_module_kernel,
        out_shape=jax.ShapeDtypeStruct((N, H, WC2), x_nchw.dtype),
        in_specs=[pl.BlockSpec(memory_space=pltpu.MemorySpace.VMEM)] * 7,
        out_specs=pl.BlockSpec(memory_space=pltpu.MemorySpace.VMEM),
        scratch_shapes=[pltpu.VMEM((N, H + 2, WC2), jnp.bfloat16)],
    )(xp, b1k, b2k, sel, selT, gb1, gb2)

    return jnp.transpose(out_packed.reshape(N, H, W, C2), (0, 3, 1, 2))   # back to NCHW


def _reference(x, w1, w2, g1, b1, g2, b2):
    """Pure-JAX reference (NCHW), training-mode BatchNorm."""
    def conv(x, w):
        return jax.lax.conv_general_dilated(
            x, w, (1, 1), ((1, 1), (1, 1)),
            dimension_numbers=('NCHW', 'OIHW', 'NCHW'),
            preferred_element_type=jnp.float32)

    def bn(x, g, b):
        mean = jnp.mean(x, axis=(0, 2, 3), keepdims=True)
        var = jnp.mean((x - mean) ** 2, axis=(0, 2, 3), keepdims=True)
        xhat = (x - mean) * jax.lax.rsqrt(var + EPS)
        return xhat * g.reshape(1, -1, 1, 1) + b.reshape(1, -1, 1, 1)

    y = jnp.maximum(bn(conv(x, w1), g1, b1), 0.0)
    y = jnp.maximum(bn(conv(y, w2), g2, b2), 0.0)
    return y


if __name__ == "__main__":
    # Shapes implied by the module: x = (N, n1, H, W); here N=2, n1=4, n2=8, H=W=16.
    n1, n2 = 4, 8
    N, H, W = 2, 16, 16

    key = jax.random.PRNGKey(0)
    kx, kw1, kw2 = jax.random.split(key, 3)
    x = jax.random.normal(kx, (N, n1, H, W), dtype=jnp.float32)
    # Deterministic parameter init (PyTorch shapes: Conv2d weight = (Cout, Cin, 3, 3)).
    w1 = 0.1 * jax.random.normal(kw1, (n2, n1, 3, 3), dtype=jnp.float32)
    w2 = 0.1 * jax.random.normal(kw2, (n2, n2, 3, 3), dtype=jnp.float32)
    g1 = jnp.ones((n2,), jnp.float32); b1 = jnp.zeros((n2,), jnp.float32)
    g2 = jnp.ones((n2,), jnp.float32); b2 = jnp.zeros((n2,), jnp.float32)

    fwd = jax.jit(one_module_forward)
    out = jax.block_until_ready(fwd(x, w1, w2, g1, b1, g2, b2))

    ref = _reference(x, w1, w2, g1, b1, g2, b2)
    assert out.shape == (N, n2, H, W), out.shape
    # Tolerance reflects bf16 MXU operands vs. the f32 reference (intentional).
    assert jnp.allclose(out, ref, atol=2e-2, rtol=2e-2), float(jnp.max(jnp.abs(out - ref)))
    print("KERNEL_OK")
</pallas_src>

<mosaic_0001>
module attributes {stable_mosaic.version = 11 : i64} {
  func.func @_one_module_kernel(%arg0: memref<2x18x128xbf16, #tpu.memory_space<vmem>>, %arg1: memref<384x128xbf16, #tpu.memory_space<vmem>>, %arg2: memref<384x128xbf16, #tpu.memory_space<vmem>>, %arg3: memref<128x8xf32, #tpu.memory_space<vmem>>, %arg4: memref<8x128xf32, #tpu.memory_space<vmem>>, %arg5: memref<2x8xf32, #tpu.memory_space<vmem>>, %arg6: memref<2x8xf32, #tpu.memory_space<vmem>>, %arg7: memref<2x16x128xf32, #tpu.memory_space<vmem>>, %arg8: memref<2x18x128xbf16, #tpu.memory_space<vmem>>) attributes {dimension_semantics = [], scalar_prefetch = 0 : i64, scratch_operands = 1 : i64, tpu.core_type = #tpu.core_type<tc>} {
    %c0 = arith.constant 0 : index
    %c0_0 = arith.constant 0 : index
    %c0_1 = arith.constant 0 : index
    %0 = vector.load %arg0[%c0, %c0_0, %c0_1] : memref<2x18x128xbf16, #tpu.memory_space<vmem>>, vector<2x16x128xbf16>
    %1 = vector.shape_cast %0 : vector<2x16x128xbf16> to vector<32x128xbf16>
    %c0_2 = arith.constant 0 : index
    %c1 = arith.constant 1 : index
    %c0_3 = arith.constant 0 : index
    %2 = vector.load %arg0[%c0_2, %c1, %c0_3] : memref<2x18x128xbf16, #tpu.memory_space<vmem>>, vector<2x16x128xbf16>
    %3 = vector.shape_cast %2 : vector<2x16x128xbf16> to vector<32x128xbf16>
    %c0_4 = arith.constant 0 : index
    %c2 = arith.constant 2 : index
    %c0_5 = arith.constant 0 : index
    %4 = vector.load %arg0[%c0_4, %c2, %c0_5] : memref<2x18x128xbf16, #tpu.memory_space<vmem>>, vector<2x16x128xbf16>
    %5 = vector.shape_cast %4 : vector<2x16x128xbf16> to vector<32x128xbf16>
    %6 = tpu.concatenate %1, %3, %5 in 1 : vector<32x128xbf16>, vector<32x128xbf16>, vector<32x128xbf16> -> vector<32x384xbf16>
    %c0_6 = arith.constant 0 : index
    %c0_7 = arith.constant 0 : index
    %7 = vector.load %arg1[%c0_6, %c0_7] : memref<384x128xbf16, #tpu.memory_space<vmem>>, vector<384x128xbf16>
    %cst = arith.constant dense<0.000000e+00> : vector<32x128xf32>
    %8 = tpu.matmul %6, %7, %cst {dimension_numbers = #tpu.dot_dimension_numbers<[1], [0], [0], [1], [0, 0, 1, 1], [], []>} : vector<32x384xbf16>, vector<384x128xbf16>, vector<32x128xf32> -> vector<32x128xf32>
    %cst_8 = arith.constant dense<0.000000e+00> : vector<128xf32>
    %9 = vector.multi_reduction <add>, %8, %cst_8 [0] : vector<32x128xf32> to vector<128xf32>
    %10 = vector.shape_cast %9 : vector<128xf32> to vector<1x128xf32>
    %11 = arith.mulf %8, %8 : vector<32x128xf32>
    %cst_9 = arith.constant dense<0.000000e+00> : vector<128xf32>
    %12 = vector.multi_reduction <add>, %11, %cst_9 [0] : vector<32x128xf32> to vector<128xf32>
    %13 = vector.shape_cast %12 : vector<128xf32> to vector<1x128xf32>
    %14 = tpu.concatenate %10, %13 in 0 : vector<1x128xf32>, vector<1x128xf32> -> vector<2x128xf32>
    %c0_10 = arith.constant 0 : index
    %c0_11 = arith.constant 0 : index
    %15 = vector.load %arg3[%c0_10, %c0_11] : memref<128x8xf32, #tpu.memory_space<vmem>>, vector<128x8xf32>
    %cst_12 = arith.constant dense<0.000000e+00> : vector<2x8xf32>
    %16 = tpu.matmul %14, %15, %cst_12 {dimension_numbers = #tpu.dot_dimension_numbers<[1], [0], [0], [1], [0, 0, 1, 1], [], []>} : vector<2x128xf32>, vector<128x8xf32>, vector<2x8xf32> -> vector<2x8xf32>
    %17 = vector.extract_strided_slice %16 {offsets = [0, 0], sizes = [1, 8], strides = [1, 1]} : vector<2x8xf32> to vector<1x8xf32>
    %cst_13 = arith.constant 0.001953125 : f32
    %18 = vector.broadcast %cst_13 : f32 to vector<1x8xf32>
    %19 = arith.mulf %17, %18 : vector<1x8xf32>
    %20 = vector.extract_strided_slice %16 {offsets = [1, 0], sizes = [1, 8], strides = [1, 1]} : vector<2x8xf32> to vector<1x8xf32>
    %cst_14 = arith.constant 0.001953125 : f32
    %21 = vector.broadcast %cst_14 : f32 to vector<1x8xf32>
    %22 = arith.mulf %20, %21 : vector<1x8xf32>
    %23 = arith.mulf %19, %19 : vector<1x8xf32>
    %24 = arith.subf %22, %23 : vector<1x8xf32>
    %c0_15 = arith.constant 0 : index
    %c0_16 = arith.constant 0 : index
    %25 = vector.load %arg5[%c0_15, %c0_16] : memref<2x8xf32, #tpu.memory_space<vmem>>, vector<2x8xf32>
    %26 = vector.extract_strided_slice %25 {offsets = [0, 0], sizes = [1, 8], strides = [1, 1]} : vector<2x8xf32> to vector<1x8xf32>
    %cst_17 = arith.constant 9.99999974E-6 : f32
    %27 = vector.broadcast %cst_17 : f32 to vector<1x8xf32>
    %28 = arith.addf %24, %27 : vector<1x8xf32>
    %29 = math.rsqrt %28 : vector<1x8xf32>
    %30 = arith.mulf %26, %29 : vector<1x8xf32>
    %31 = vector.extract_strided_slice %25 {offsets = [1, 0], sizes = [1, 8], strides = [1, 1]} : vector<2x8xf32> to vector<1x8xf32>
    %32 = arith.mulf %19, %30 : vector<1x8xf32>
    %33 = arith.subf %31, %32 : vector<1x8xf32>
    %34 = tpu.concatenate %30, %33 in 0 : vector<1x8xf32>, vector<1x8xf32> -> vector<2x8xf32>
    %c0_18 = arith.constant 0 : index
    %c0_19 = arith.constant 0 : index
    %35 = vector.load %arg4[%c0_18, %c0_19] : memref<8x128xf32, #tpu.memory_space<vmem>>, vector<8x128xf32>
    %cst_20 = arith.constant dense<0.000000e+00> : vector<2x128xf32>
    %36 = tpu.matmul %34, %35, %cst_20 {dimension_numbers = #tpu.dot_dimension_numbers<[1], [0], [0], [1], [0, 0, 1, 1], [], []>} : vector<2x8xf32>, vector<8x128xf32>, vector<2x128xf32> -> vector<2x128xf32>
    %37 = vector.extract_strided_slice %36 {offsets = [0, 0], sizes = [1, 128], strides = [1, 1]} : vector<2x128xf32> to vector<1x128xf32>
    %38 = vector.broadcast %37 : vector<1x128xf32> to vector<32x128xf32>
    %39 = arith.mulf %8, %38 : vector<32x128xf32>
    %40 = vector.extract_strided_slice %36 {offsets = [1, 0], sizes = [1, 128], strides = [1, 1]} : vector<2x128xf32> to vector<1x128xf32>
    %41 = vector.broadcast %40 : vector<1x128xf32> to vector<32x128xf32>
    %42 = arith.addf %39, %41 : vector<32x128xf32>
    %cst_21 = arith.constant 0.000000e+00 : f32
    %43 = vector.broadcast %cst_21 : f32 to vector<32x128xf32>
    %44 = arith.maximumf %42, %43 : vector<32x128xf32>
    %cst_22 = arith.constant 0.000000e+00 : bf16
    %45 = vector.broadcast %cst_22 : bf16 to vector<2x1x128xbf16>
    %c0_23 = arith.constant 0 : index
    %c0_24 = arith.constant 0 : index
    %c0_25 = arith.constant 0 : index
    %46 = vector.load %arg8[%c0_23, %c0_24, %c0_25] : memref<2x18x128xbf16, #tpu.memory_space<vmem>>, vector<2x1x128xbf16>
    tpu.vector_store %arg8[%c0_23, %c0_24, %c0_25], %45 {strides = array<i32>} : memref<2x18x128xbf16, #tpu.memory_space<vmem>>, vector<2x1x128xbf16>,
    %cst_26 = arith.constant 0.000000e+00 : bf16
    %47 = vector.broadcast %cst_26 : bf16 to vector<2x1x128xbf16>
    %c0_27 = arith.constant 0 : index
    %c17 = arith.constant 17 : index
    %c0_28 = arith.constant 0 : index
    %48 = vector.load %arg8[%c0_27, %c17, %c0_28] : memref<2x18x128xbf16, #tpu.memory_space<vmem>>, vector<2x1x128xbf16>
    tpu.vector_store %arg8[%c0_27, %c17, %c0_28], %47 {strides = array<i32>} : memref<2x18x128xbf16, #tpu.memory_space<vmem>>, vector<2x1x128xbf16>,
    %49 = vector.shape_cast %44 : vector<32x128xf32> to vector<2x16x128xf32>
    %50 = arith.truncf %49 : vector<2x16x128xf32> to vector<2x16x128xbf16>
    %c0_29 = arith.constant 0 : index
    %c1_30 = arith.constant 1 : index
    %c0_31 = arith.constant 0 : index
    %51 = vector.load %arg8[%c0_29, %c1_30, %c0_31] : memref<2x18x128xbf16, #tpu.memory_space<vmem>>, vector<2x16x128xbf16>
    tpu.vector_store %arg8[%c0_29, %c1_30, %c0_31], %50 {strides = array<i32>} : memref<2x18x128xbf16, #tpu.memory_space<vmem>>, vector<2x16x128xbf16>,
    %c0_32 = arith.constant 0 : index
    %c0_33 = arith.constant 0 : index
    %c0_34 = arith.constant 0 : index
    %52 = vector.load %arg8[%c0_32, %c0_33, %c0_34] : memref<2x18x128xbf16, #tpu.memory_space<vmem>>, vector<2x16x128xbf16>
    %53 = vector.shape_cast %52 : vector<2x16x128xbf16> to vector<32x128xbf16>
    %c0_35 = arith.constant 0 : index
    %c1_36 = arith.constant 1 : index
    %c0_37 = arith.constant 0 : index
    %54 = vector.load %arg8[%c0_35, %c1_36, %c0_37] : memref<2x18x128xbf16, #tpu.memory_space<vmem>>, vector<2x16x128xbf16>
    %55 = vector.shape_cast %54 : vector<2x16x128xbf16> to vector<32x128xbf16>
    %c0_38 = arith.constant 0 : index
    %c2_39 = arith.constant 2 : index
    %c0_40 = arith.constant 0 : index
    %56 = vector.load %arg8[%c0_38, %c2_39, %c0_40] : memref<2x18x128xbf16, #tpu.memory_space<vmem>>, vector<2x16x128xbf16>
    %57 = vector.shape_cast %56 : vector<2x16x128xbf16> to vector<32x128xbf16>
    %58 = tpu.concatenate %53, %55, %57 in 1 : vector<32x128xbf16>, vector<32x128xbf16>, vector<32x128xbf16> -> vector<32x384xbf16>
    %c0_41 = arith.constant 0 : index
    %c0_42 = arith.constant 0 : index
    %59 = vector.load %arg2[%c0_41, %c0_42] : memref<384x128xbf16, #tpu.memory_space<vmem>>, vector<384x128xbf16>
    %cst_43 = arith.constant dense<0.000000e+00> : vector<32x128xf32>
    %60 = tpu.matmul %58, %59, %cst_43 {dimension_numbers = #tpu.dot_dimension_numbers<[1], [0], [0], [1], [0, 0, 1, 1], [], []>} : vector<32x384xbf16>, vector<384x128xbf16>, vector<32x128xf32> -> vector<32x128xf32>
    %cst_44 = arith.constant dense<0.000000e+00> : vector<128xf32>
    %61 = vector.multi_reduction <add>, %60, %cst_44 [0] : vector<32x128xf32> to vector<128xf32>
    %62 = vector.shape_cast %61 : vector<128xf32> to vector<1x128xf32>
    %63 = arith.mulf %60, %60 : vector<32x128xf32>
    %cst_45 = arith.constant dense<0.000000e+00> : vector<128xf32>
    %64 = vector.multi_reduction <add>, %63, %cst_45 [0] : vector<32x128xf32> to vector<128xf32>
    %65 = vector.shape_cast %64 : vector<128xf32> to vector<1x128xf32>
    %66 = tpu.concatenate %62, %65 in 0 : vector<1x128xf32>, vector<1x128xf32> -> vector<2x128xf32>
    %c0_46 = arith.constant 0 : index
    %c0_47 = arith.constant 0 : index
    %67 = vector.load %arg3[%c0_46, %c0_47] : memref<128x8xf32, #tpu.memory_space<vmem>>, vector<128x8xf32>
    %cst_48 = arith.constant dense<0.000000e+00> : vector<2x8xf32>
    %68 = tpu.matmul %66, %67, %cst_48 {dimension_numbers = #tpu.dot_dimension_numbers<[1], [0], [0], [1], [0, 0, 1, 1], [], []>} : vector<2x128xf32>, vector<128x8xf32>, vector<2x8xf32> -> vector<2x8xf32>
    %69 = vector.extract_strided_slice %68 {offsets = [0, 0], sizes = [1, 8], strides = [1, 1]} : vector<2x8xf32> to vector<1x8xf32>
    %cst_49 = arith.constant 0.001953125 : f32
    %70 = vector.broadcast %cst_49 : f32 to vector<1x8xf32>
    %71 = arith.mulf %69, %70 : vector<1x8xf32>
    %72 = vector.extract_strided_slice %68 {offsets = [1, 0], sizes = [1, 8], strides = [1, 1]} : vector<2x8xf32> to vector<1x8xf32>
    %cst_50 = arith.constant 0.001953125 : f32
    %73 = vector.broadcast %cst_50 : f32 to vector<1x8xf32>
    %74 = arith.mulf %72, %73 : vector<1x8xf32>
    %75 = arith.mulf %71, %71 : vector<1x8xf32>
    %76 = arith.subf %74, %75 : vector<1x8xf32>
    %c0_51 = arith.constant 0 : index
    %c0_52 = arith.constant 0 : index
    %77 = vector.load %arg6[%c0_51, %c0_52] : memref<2x8xf32, #tpu.memory_space<vmem>>, vector<2x8xf32>
    %78 = vector.extract_strided_slice %77 {offsets = [0, 0], sizes = [1, 8], strides = [1, 1]} : vector<2x8xf32> to vector<1x8xf32>
    %cst_53 = arith.constant 9.99999974E-6 : f32
    %79 = vector.broadcast %cst_53 : f32 to vector<1x8xf32>
    %80 = arith.addf %76, %79 : vector<1x8xf32>
    %81 = math.rsqrt %80 : vector<1x8xf32>
    %82 = arith.mulf %78, %81 : vector<1x8xf32>
    %83 = vector.extract_strided_slice %77 {offsets = [1, 0], sizes = [1, 8], strides = [1, 1]} : vector<2x8xf32> to vector<1x8xf32>
    %84 = arith.mulf %71, %82 : vector<1x8xf32>
    %85 = arith.subf %83, %84 : vector<1x8xf32>
    %86 = tpu.concatenate %82, %85 in 0 : vector<1x8xf32>, vector<1x8xf32> -> vector<2x8xf32>
    %c0_54 = arith.constant 0 : index
    %c0_55 = arith.constant 0 : index
    %87 = vector.load %arg4[%c0_54, %c0_55] : memref<8x128xf32, #tpu.memory_space<vmem>>, vector<8x128xf32>
    %cst_56 = arith.constant dense<0.000000e+00> : vector<2x128xf32>
    %88 = tpu.matmul %86, %87, %cst_56 {dimension_numbers = #tpu.dot_dimension_numbers<[1], [0], [0], [1], [0, 0, 1, 1], [], []>} : vector<2x8xf32>, vector<8x128xf32>, vector<2x128xf32> -> vector<2x128xf32>
    %89 = vector.extract_strided_slice %88 {offsets = [0, 0], sizes = [1, 128], strides = [1, 1]} : vector<2x128xf32> to vector<1x128xf32>
    %90 = vector.broadcast %89 : vector<1x128xf32> to vector<32x128xf32>
    %91 = arith.mulf %60, %90 : vector<32x128xf32>
    %92 = vector.extract_strided_slice %88 {offsets = [1, 0], sizes = [1, 128], strides = [1, 1]} : vector<2x128xf32> to vector<1x128xf32>
    %93 = vector.broadcast %92 : vector<1x128xf32> to vector<32x128xf32>
    %94 = arith.addf %91, %93 : vector<32x128xf32>
    %cst_57 = arith.constant 0.000000e+00 : f32
    %95 = vector.broadcast %cst_57 : f32 to vector<32x128xf32>
    %96 = arith.maximumf %94, %95 : vector<32x128xf32>
    %97 = vector.shape_cast %96 : vector<32x128xf32> to vector<2x16x128xf32>
    %c0_58 = arith.constant 0 : index
    %c0_59 = arith.constant 0 : index
    %c0_60 = arith.constant 0 : index
    %98 = vector.load %arg7[%c0_58, %c0_59, %c0_60] : memref<2x16x128xf32, #tpu.memory_space<vmem>>, vector<2x16x128xf32>
    tpu.vector_store %arg7[%c0_58, %c0_59, %c0_60], %97 {strides = array<i32>} : memref<2x16x128xf32, #tpu.memory_space<vmem>>, vector<2x16x128xf32>,
    return
  }
}

</mosaic_0001>

<bundles_post_ra>
// kernel: tile.9
= control target key start
LH: loop header
LB: loop body
LE: loop exit
PB: predicated region body
PF: predicated region fallthrough
CT: control target
= control target key end

     0   :  { %vm6_vm0 = vcmask 1043458   ;;  %vm10_vm1 = vcmask 1045508   ;;  %vm14_vm2 = vcmask 1047558   ;;  %s19_s6 = smov 3  ;;  %s22_s7 = smov 12  ;;  %vm16_vm3 = vcmask 64512   ;;  %s736_s0 = inlined_call_operand.vmem [shape: f32[16,8,8], index: 0, kind: input, shape index: {}]   ;;  %s737_s1 = inlined_call_operand.vmem [shape: f32[128,8], index: 1, kind: output, shape index: {}]  }
   0x1   :  { %v348_v0 = vld [vmem:[%s736_s0 + $0xf] ss:$16 sm:%s19_s6]   ;;  %s27_s12 = smov 48  ;;  %s32_s13 = smov 192  ;;  %vm38_vm4 = vcmask 1048512   ;;  %vm60_vm5 = vcmask 982912  }
   0x2   :  { %v349_v1 = vld [vmem:[%s736_s0 + $0xf] ss:$16 sm:%s22_s7]   ;;  %s63_s18 = smov 3  ;;  %s66_s21 = smov 12  ;;  %vm82_vm6 = vcmask 917312   ;;  %vm104_vm7 = vcmask 851712  }
   0x3   :  { %v25_v2 = vsel %vm6_vm0, %v349_v1, %v348_v0  ;;  %v350_v3 = vld [vmem:[%s736_s0 + $0xf] ss:$16 sm:%s27_s12]   ;;  %v356_v6 = vld [vmem:[%s736_s0 + $0xd] ss:$16 sm:%s63_s18]   ;;  %s71_s22 = smov 48  ;;  %s76_s27 = smov 192 }
   0x4   :  { %v351_v4 = vld [vmem:[%s736_s0 + $0xf] ss:$16 sm:%s32_s13]   ;;  %v30_v5 = vsel %vm10_vm1, %v350_v3, %v25_v2  ;;  %v357_v8 = vld [vmem:[%s736_s0 + $0xd] ss:$16 sm:%s66_s21]   ;;  %s423_s28 = smov 120   ;;  %s41_s2 = smov 3 }
   0x5   :  { %v35_v7 = vsel %vm14_vm2, %v351_v4, %v30_v5  ;;  %v358_v9 = vld [vmem:[%s736_s0 + $0xd] ss:$16 sm:%s71_s22]   ;;  %v69_v10 = vsel %vm6_vm0, %v357_v8, %v356_v6  ;;  %s44_s3 = smov 12  ;;  %v352_v13 = vld [vmem:[%s736_s0 + $0xe] ss:$16 sm:%s41_s2]   ;;  %s49_s8 = smov 48 }
   0x6   :  { %36 = vrot.lane.b32.xlu0 %v35_v7, %s423_s28  ;;  %v359_v11 = vld [vmem:[%s736_s0 + $0xd] ss:$16 sm:%s76_s27]   ;;  %v74_v12 = vsel %vm10_vm1, %v358_v9, %v69_v10  ;;  %s54_s9 = smov 192  ;;  %s85_s14 = smov 3  ;;  %vm126_vm8 = vcmask 786112   ;;  %vm148_vm9 = vcmask 720512  }
   0x7   :  { %v353_v14 = vld [vmem:[%s736_s0 + $0xe] ss:$16 sm:%s44_s3]   ;;  %v79_v15 = vsel %vm14_vm2, %v359_v11, %v74_v12  ;;  %s424_s15 = smov 104   ;;  %v360_v20 = vld [vmem:[%s736_s0 + $0xc] ss:$16 sm:%s85_s14]   ;;  %s88_s18 = smov 12 }
   0x8   :  { %v47_v16 = vsel %vm6_vm0, %v353_v14, %v352_v13  ;;  %v354_v17 = vld [vmem:[%s736_s0 + $0xe] ss:$16 sm:%s49_s8]   ;;  %80 = vrot.lane.b32.xlu1 %v79_v15, %s424_s15  ;;  %s93_s19 = smov 48  ;;  %s98_s24 = smov 192  ;;  %vm170_vm10 = vcmask 654912   ;;  %vm192_vm11 = vcmask 589312  }
   0x9   :  { %v355_v18 = vld [vmem:[%s736_s0 + $0xe] ss:$16 sm:%s54_s9]   ;;  %v52_v19 = vsel %vm10_vm1, %v354_v17, %v47_v16  ;;  %v361_v22 = vld [vmem:[%s736_s0 + $0xc] ss:$16 sm:%s88_s18]   ;;  %s425_s25 = smov 112   ;;  %s107_s28 = smov 3 }
   0xa   :  { %v57_v21 = vsel %vm14_vm2, %v355_v18, %v52_v19  ;;  %v362_v23 = vld [vmem:[%s736_s0 + $0xc] ss:$16 sm:%s93_s19]   ;;  %v91_v24 = vsel %vm6_vm0, %v361_v22, %v360_v20  ;;  %s110_s29 = smov 12  ;;  %v364_v27 = vld [vmem:[%s736_s0 + $0xb] ss:$16 sm:%s107_s28]   ;;  %s115_s5 = smov 48 }
   0xb   :  { %58 = vrot.lane.b32.xlu0 %v57_v21, %s425_s25  ;;  %v363_v25 = vld [vmem:[%s736_s0 + $0xc] ss:$16 sm:%s98_s24]   ;;  %v96_v26 = vsel %vm10_vm1, %v362_v23, %v91_v24  ;;  %s120_s6 = smov 192  ;;  %s129_s11 = smov 3  ;;  %vm214_vm12 = vcmask 523712   ;;  %vm236_vm13 = vcmask 458112  }
   0xc   :  { %v365_v28 = vld [vmem:[%s736_s0 + $0xb] ss:$16 sm:%s110_s29]   ;;  %v101_v29 = vsel %vm14_vm2, %v363_v25, %v96_v26  ;;  %s426_s12 = smov 96   ;;  %v368_v34 = vld [vmem:[%s736_s0 + $0xa] ss:$16 sm:%s129_s11]   ;;  %s132_s15 = smov 12 }
   0xd   :  { %v113_v30 = vsel %vm6_vm0, %v365_v28, %v364_v27  ;;  %v366_v31 = vld [vmem:[%s736_s0 + $0xb] ss:$16 sm:%s115_s5]   ;;  %102 = vrot.lane.b32.xlu1 %v101_v29, %s426_s12  ;;  %s137_s16 = smov 48  ;;  %s142_s21 = smov 192  ;;  %vm258_vm14 = vcmask 392512   ;;  %vm280_vm15 = vcmask 326912  }
   0xe   :  { %v367_v32 = vld [vmem:[%s736_s0 + $0xb] ss:$16 sm:%s120_s6]   ;;  %v118_v33 = vsel %vm10_vm1, %v366_v31, %v113_v30  ;;  %v369_v36 = vld [vmem:[%s736_s0 + $0xa] ss:$16 sm:%s132_s15]   ;;  %s427_s22 = smov 88   ;;  %s151_s25 = smov 3 }
   0xf   :  { %v123_v35 = vsel %vm14_vm2, %v367_v32, %v118_v33  ;;  %v370_v37 = vld [vmem:[%s736_s0 + $0xa] ss:$16 sm:%s137_s16]   ;;  %v135_v38 = vsel %vm6_vm0, %v369_v36, %v368_v34  ;;  %s154_s26 = smov 12  ;;  %v372_v41 = vld [vmem:[%s736_s0 + $0x9] ss:$16 sm:%s151_s25]   ;;  %s159_s2 = smov 48 }
  0x10   :  { %124 = vrot.lane.b32.xlu0 %v123_v35, %s427_s22  ;;  %v371_v39 = vld [vmem:[%s736_s0 + $0xa] ss:$16 sm:%s142_s21]   ;;  %v140_v40 = vsel %vm10_vm1, %v370_v37, %v135_v38  ;;  %s164_s3 = smov 192  ;;  %s173_s8 = smov 3 }
  0x11   :  { %v373_v42 = vld [vmem:[%s736_s0 + $0x9] ss:$16 sm:%s154_s26]   ;;  %v145_v43 = vsel %vm14_vm2, %v371_v39, %v140_v40  ;;  %s428_s9 = smov 80   ;;  %v376_v48 = vld [vmem:[%s736_s0 + $0x8] ss:$16 sm:%s173_s8]   ;;  %s176_s12 = smov 12 }
  0x12   :  { %v157_v44 = vsel %vm6_vm0, %v373_v42, %v372_v41  ;;  %v374_v45 = vld [vmem:[%s736_s0 + $0x9] ss:$16 sm:%s159_s2]   ;;  %146 = vrot.lane.b32.xlu1 %v145_v43, %s428_s9  ;;  %s181_s13 = smov 48  ;;  %s186_s18 = smov 192 }
  0x13   :  { %v375_v46 = vld [vmem:[%s736_s0 + $0x9] ss:$16 sm:%s164_s3]   ;;  %v162_v47 = vsel %vm10_vm1, %v374_v45, %v157_v44  ;;  %v377_v50 = vld [vmem:[%s736_s0 + $0x8] ss:$16 sm:%s176_s12]   ;;  %s429_s19 = smov 72   ;;  %s195_s22 = smov 3 }
  0x14   :  { %v167_v49 = vsel %vm14_vm2, %v375_v46, %v162_v47  ;;  %v378_v51 = vld [vmem:[%s736_s0 + $0x8] ss:$16 sm:%s181_s13]   ;;  %v179_v52 = vsel %vm6_vm0, %v377_v50, %v376_v48  ;;  %s198_s23 = smov 12  ;;  %v380_v55 = vld [vmem:[%s736_s0 + $0x7] ss:$16 sm:%s195_s22]   ;;  %s203_s28 = smov 48 }
  0x15   :  { %168 = vrot.lane.b32.xlu0 %v167_v49, %s429_s19  ;;  %v379_v53 = vld [vmem:[%s736_s0 + $0x8] ss:$16 sm:%s186_s18]   ;;  %v184_v54 = vsel %vm10_vm1, %v378_v51, %v179_v52  ;;  %s208_s29 = smov 192  ;;  %s217_s5 = smov 3 }
  0x16   :  { %v381_v56 = vld [vmem:[%s736_s0 + $0x7] ss:$16 sm:%s198_s23]   ;;  %v189_v57 = vsel %vm14_vm2, %v379_v53, %v184_v54  ;;  %s430_s6 = smov 64   ;;  %v384_v62 = vld [vmem:[%s736_s0 + $0x6] ss:$16 sm:%s217_s5]   ;;  %s220_s9 = smov 12 }
  0x17   :  { %v201_v58 = vsel %vm6_vm0, %v381_v56, %v380_v55  ;;  %v382_v59 = vld [vmem:[%s736_s0 + $0x7] ss:$16 sm:%s203_s28]   ;;  %190 = vrot.lane.b32.xlu1 %v189_v57, %s430_s6  ;;  %s225_s10 = smov 48  ;;  %s230_s15 = smov 192 }
  0x18   :  { %v383_v60 = vld [vmem:[%s736_s0 + $0x7] ss:$16 sm:%s208_s29]   ;;  %v206_v61 = vsel %vm10_vm1, %v382_v59, %v201_v58  ;;  %v385_v0 = vld [vmem:[%s736_s0 + $0x6] ss:$16 sm:%s220_s9]   ;;  %s431_s16 = smov 56   ;;  %s239_s19 = smov 3 }
  0x19   :  { %v211_v63 = vsel %vm14_vm2, %v383_v60, %v206_v61  ;;  %v386_v1 = vld [vmem:[%s736_s0 + $0x6] ss:$16 sm:%s225_s10]   ;;  %v223_v2 = vsel %vm6_vm0, %v385_v0, %v384_v62  ;;  %s242_s20 = smov 12  ;;  %v388_v5 = vld [vmem:[%s736_s0 + $0x5] ss:$16 sm:%s239_s19]   ;;  %s247_s25 = smov 48 }
  0x1a   :  { %212 = vrot.lane.b32.xlu0 %v211_v63, %s431_s16  ;;  %v387_v3 = vld [vmem:[%s736_s0 + $0x6] ss:$16 sm:%s230_s15]   ;;  %v228_v4 = vsel %vm10_vm1, %v386_v1, %v223_v2  ;;  %s252_s26 = smov 192  ;;  %s261_s2 = smov 3 }
  0x1b   :  { %v389_v6 = vld [vmem:[%s736_s0 + $0x5] ss:$16 sm:%s242_s20]   ;;  %v233_v7 = vsel %vm14_vm2, %v387_v3, %v228_v4  ;;  %s432_s3 = smov 48   ;;  %v392_v12 = vld [vmem:[%s736_s0 + $0x4] ss:$16 sm:%s261_s2]   ;;  %s264_s6 = smov 12 }
  0x1c   :  { %v245_v8 = vsel %vm6_vm0, %v389_v6, %v388_v5  ;;  %v390_v9 = vld [vmem:[%s736_s0 + $0x5] ss:$16 sm:%s247_s25]   ;;  %234 = vrot.lane.b32.xlu1 %v233_v7, %s432_s3  ;;  %s269_s7 = smov 48  ;;  %s274_s12 = smov 192 }
  0x1d   :  { %v391_v10 = vld [vmem:[%s736_s0 + $0x5] ss:$16 sm:%s252_s26]   ;;  %v250_v11 = vsel %vm10_vm1, %v390_v9, %v245_v8  ;;  %v393_v14 = vld [vmem:[%s736_s0 + $0x4] ss:$16 sm:%s264_s6]   ;;  %s433_s13 = smov 40   ;;  %s283_s16 = smov 3 }
  0x1e   :  { %v255_v13 = vsel %vm14_vm2, %v391_v10, %v250_v11  ;;  %v394_v15 = vld [vmem:[%s736_s0 + $0x4] ss:$16 sm:%s269_s7]   ;;  %v267_v16 = vsel %vm6_vm0, %v393_v14, %v392_v12  ;;  %s286_s17 = smov 12  ;;  %v396_v19 = vld [vmem:[%s736_s0 + $0x3] ss:$16 sm:%s283_s16]   ;;  %s291_s22 = smov 48 }
  0x1f   :  { %256 = vrot.lane.b32.xlu0 %v255_v13, %s433_s13  ;;  %v395_v17 = vld [vmem:[%s736_s0 + $0x4] ss:$16 sm:%s274_s12]   ;;  %v272_v18 = vsel %vm10_vm1, %v394_v15, %v267_v16  ;;  %s296_s23 = smov 192  ;;  %s305_s28 = smov 3 }
  0x20   :  { %v397_v20 = vld [vmem:[%s736_s0 + $0x3] ss:$16 sm:%s286_s17]   ;;  %v277_v21 = vsel %vm14_vm2, %v395_v17, %v272_v18  ;;  %s434_s29 = smov 32   ;;  %v400_v26 = vld [vmem:[%s736_s0 + $0x2] ss:$16 sm:%s305_s28]   ;;  %s308_s3 = smov 12 }
  0x21   :  { %v289_v22 = vsel %vm6_vm0, %v397_v20, %v396_v19  ;;  %v398_v23 = vld [vmem:[%s736_s0 + $0x3] ss:$16 sm:%s291_s22]   ;;  %278 = vrot.lane.b32.xlu1 %v277_v21, %s434_s29  ;;  %s313_s4 = smov 48  ;;  %s318_s9 = smov 192 }
  0x22   :  { %v399_v24 = vld [vmem:[%s736_s0 + $0x3] ss:$16 sm:%s296_s23]   ;;  %v294_v25 = vsel %vm10_vm1, %v398_v23, %v289_v22  ;;  %v401_v28 = vld [vmem:[%s736_s0 + $0x2] ss:$16 sm:%s308_s3]   ;;  %s435_s10 = smov 24   ;;  %s327_s13 = smov 3 }
  0x23   :  { %v299_v27 = vsel %vm14_vm2, %v399_v24, %v294_v25  ;;  %v402_v29 = vld [vmem:[%s736_s0 + $0x2] ss:$16 sm:%s313_s4]   ;;  %v311_v30 = vsel %vm6_vm0, %v401_v28, %v400_v26  ;;  %s330_s14 = smov 12  ;;  %v404_v33 = vld [vmem:[%s736_s0 + $0x1] ss:$16 sm:%s327_s13]   ;;  %s335_s19 = smov 48 }
  0x24   :  { %300 = vrot.lane.b32.xlu0 %v299_v27, %s435_s10  ;;  %v403_v31 = vld [vmem:[%s736_s0 + $0x2] ss:$16 sm:%s318_s9]   ;;  %v316_v32 = vsel %vm10_vm1, %v402_v29, %v311_v30  ;;  %s340_s20 = smov 192  ;;  %s2_s25 = smov 3 }
  0x25   :  { %v405_v34 = vld [vmem:[%s736_s0 + $0x1] ss:$16 sm:%s330_s14]   ;;  %v321_v35 = vsel %vm14_vm2, %v403_v31, %v316_v32  ;;  %s436_s26 = smov 16   ;;  %s4_s27 = smov 12  ;;  %v3_v40 = vld [vmem:[%s736_s0] ss:$16 sm:%s2_s25]  }
  0x26   :  { %v333_v36 = vsel %vm6_vm0, %v405_v34, %v404_v33  ;;  %v406_v37 = vld [vmem:[%s736_s0 + $0x1] ss:$16 sm:%s335_s19]   ;;  %322 = vrot.lane.b32.xlu1 %v321_v35, %s436_s26  ;;  %s8_s28 = smov 48  ;;  %s12_s2 = smov 192 }
  0x27   :  { %v407_v38 = vld [vmem:[%s736_s0 + $0x1] ss:$16 sm:%s340_s20]   ;;  %v338_v39 = vsel %vm10_vm1, %v406_v37, %v333_v36  ;;  %v5_v42 = vld [vmem:[%s736_s0] ss:$16 sm:%s4_s27]   ;;  %s437_s7 = smov 8  }
  0x28   :  { %v343_v41 = vsel %vm14_vm2, %v407_v38, %v338_v39  ;;  %v9_v43 = vld [vmem:[%s736_s0] ss:$16 sm:%s8_s28]   ;;  %v7_v44 = vsel %vm6_vm0, %v5_v42, %v3_v40  ;;  %vm302_vm0 = vcmask 261312  }
  0x29   :  { %344 = vrot.lane.b32.xlu0 %v343_v41, %s437_s7  ;;  %v13_v45 = vld [vmem:[%s736_s0] ss:$16 sm:%s12_s2]   ;;  %v11_v46 = vsel %vm10_vm1, %v9_v43, %v7_v44  ;;  %vm324_vm1 = vcmask 195712  }
  0x2a   :  { %v15_v47 = vsel %vm14_vm2, %v13_v45, %v11_v46  ;;  %vm346_vm2 = vcmask 130112  }
  0x2b   :  { %17 = vst.msk [vmem:[%s737_s1] sm:$0xff] %vm16_vm3, %v15_v47  }
  0x78   :  { %v37_v48 = vpop.permute.xlu0 %36  }
  0x79   :  { %39 = vst.msk [vmem:[%s737_s1] sm:$0xff] %vm38_vm4, %v37_v48  }
  0x7a   :  { %v81_v49 = vpop.permute.xlu1 %80  }
  0x7d   :  { %v59_v50 = vpop.permute.xlu0 %58  }
  0x7e   :  { %61 = vst.msk [vmem:[%s737_s1] sm:$0xff] %vm60_vm5, %v59_v50  }
  0x7f   :  { %83 = vst.msk [vmem:[%s737_s1] sm:$0xff] %vm82_vm6, %v81_v49   ;;  %v103_v51 = vpop.permute.xlu1 %102  }
  0x80   :  { %105 = vst.msk [vmem:[%s737_s1] sm:$0xff] %vm104_vm7, %v103_v51  }
  0x82   :  { %v125_v52 = vpop.permute.xlu0 %124  }
  0x83   :  { %127 = vst.msk [vmem:[%s737_s1] sm:$0xff] %vm126_vm8, %v125_v52  }
  0x84   :  { %v147_v53 = vpop.permute.xlu1 %146  }
  0x85   :  { %149 = vst.msk [vmem:[%s737_s1] sm:$0xff] %vm148_vm9, %v147_v53  }
  0x87   :  { %v169_v54 = vpop.permute.xlu0 %168  }
  0x88   :  { %171 = vst.msk [vmem:[%s737_s1] sm:$0xff] %vm170_vm10, %v169_v54  }
  0x89   :  { %v191_v55 = vpop.permute.xlu1 %190  }
  0x8a   :  { %193 = vst.msk [vmem:[%s737_s1] sm:$0xff] %vm192_vm11, %v191_v55  }
  0x8c   :  { %v213_v56 = vpop.permute.xlu0 %212  }
  0x8d   :  { %215 = vst.msk [vmem:[%s737_s1] sm:$0xff] %vm214_vm12, %v213_v56  }
  0x8e   :  { %v235_v57 = vpop.permute.xlu1 %234  }
  0x8f   :  { %237 = vst.msk [vmem:[%s737_s1] sm:$0xff] %vm236_vm13, %v235_v57  }
  0x91   :  { %v257_v58 = vpop.permute.xlu0 %256  }
  0x92   :  { %259 = vst.msk [vmem:[%s737_s1] sm:$0xff] %vm258_vm14, %v257_v58  }
  0x93   :  { %v279_v59 = vpop.permute.xlu1 %278  }
  0x94   :  { %281 = vst.msk [vmem:[%s737_s1] sm:$0xff] %vm280_vm15, %v279_v59  }
  0x96   :  { %v301_v60 = vpop.permute.xlu0 %300  }
  0x97   :  { %303 = vst.msk [vmem:[%s737_s1] sm:$0xff] %vm302_vm0, %v301_v60  }
  0x98   :  { %v323_v61 = vpop.permute.xlu1 %322  }
  0x99   :  { %325 = vst.msk [vmem:[%s737_s1] sm:$0xff] %vm324_vm1, %v323_v61  }
  0x9b   :  { %v345_v62 = vpop.permute.xlu0 %344  }
  0x9c   :  { %347 = vst.msk [vmem:[%s737_s1] sm:$0xff] %vm346_vm2, %v345_v62  }

// kernel: one_module_forward.1
= control target key start
LH: loop header
LB: loop body
LE: loop exit
PB: predicated region body
PF: predicated region fallthrough
CT: control target
= control target key end

     0   :  { %vm33_vm0 = vsmask.f32 3328  ;;  %vm34_vm1 = vsmask.f32 7440  ;;  %vm92_vm2 = vcmask 1042432   ;;  %vm93_vm3 = vcmask 1046532   ;;  %s2252_s1 = inlined_call_operand.vmem [shape: bf16[384,128], index: 1, kind: input, shape index: {}]   ;;  %s2253_s0 = inlined_call_operand.vmem [shape: bf16[2,18,128], index: 0, kind: input, shape index: {}]   ;;  %s2254_s3 = inlined_call_operand.vmem [shape: f32[128,8], index: 3, kind: input, shape index: {}]   ;;  %s2255_s4 = inlined_call_operand.vmem [shape: f32[8,128], index: 4, kind: input, shape index: {}]   ;;  %s2256_s5 = inlined_call_operand.vmem [shape: f32[2,8], index: 5, kind: input, shape index: {}]   ;;  %s2257_s2 = inlined_call_operand.vmem [shape: bf16[384,128], index: 2, kind: input, shape index: {}]   ;;  %s2258_s6 = inlined_call_operand.vmem [shape: f32[2,8], index: 6, kind: input, shape index: {}]   ;;  %s2259_s7 = inlined_call_operand.vmem [shape: f32[2,16,128], index: 7, kind: output, shape index: {}]  }
   0x1   :  { %v1717_v0 = vld [vmem:[%s2252_s1 + $0x40] sm:$0xff]   ;;  %v1720_v3 = vld [vmem:[%s2252_s1 + $0x48] sm:$0xff]   ;;  %v1723_v6 = vld [vmem:[%s2252_s1 + $0x50] sm:$0xff]   ;;  %vm1774_vm6 = vmmov 0   ;;  %vm447_vm7 = vcmask 1040384   ;;  %vm555_vm8 = vcmask 64512  }
   0x2   :  { %v1718_v1 = vld [vmem:[%s2252_s1] sm:$0xff]   ;;  %1432 = vmatprep.subr.bf16.mxu0 %v1717_v0  ;;  %v1721_v4 = vld [vmem:[%s2252_s1 + $0x8] sm:$0xff]   ;;  %v1724_v7 = vld [vmem:[%s2252_s1 + $0x10] sm:$0xff]   ;;  %vm650_vm9 = vsmask.f32 256  ;;  %vm720_vm14 = vcmask 1043456  }
   0x3   :  { %v1719_v2 = vld [vmem:[%s2252_s1 + $0x80] sm:$0xff]   ;;  %1433 = vmatpush3.bf16.msra.mxu0 %v1718_v1  ;;  %v1722_v5 = vld [vmem:[%s2252_s1 + $0x88] sm:$0xff]   ;;  %v1725_v8 = vld [vmem:[%s2252_s1 + $0x90] sm:$0xff]   ;;  %vm658_vm10 = vsmask.f32 7938 }
   0x4   :  { %1546 = vmatprep.subr.bf16.mxu1 %v1719_v2  ;;  %1434 = vmatprep.subr.bf16.mxu0 %v1720_v3  ;;  %v1726_v9 = vld [vmem:[%s2252_s1 + $0x58] sm:$0xff]   ;;  %v1729_v12 = vld [vmem:[%s2252_s1 + $0x60] sm:$0xff]   ;;  %v1732_v15 = vld [vmem:[%s2252_s1 + $0x68] sm:$0xff]   ;;  %vm678_vm13 = vsmask.f32 4368 }
   0x5   :  { %1547 = vmatpush3.bf16.msra.mxu1 %v1719_v2  ;;  %v1727_v10 = vld [vmem:[%s2252_s1 + $0x18] sm:$0xff]   ;;  %v1731_v13 = vld [vmem:[%s2252_s1 + $0xa0] sm:$0xff]   ;;  %v1734_v16 = vld [vmem:[%s2252_s1 + $0xa8] sm:$0xff]  }
   0x6   :  { %1548 = vmatprep.subr.bf16.mxu1 %v1722_v5  ;;  %v1728_v11 = vld [vmem:[%s2252_s1 + $0x98] sm:$0xff]   ;;  %v1730_v14 = vld [vmem:[%s2252_s1 + $0x20] sm:$0xff]   ;;  %v1733_v17 = vld [vmem:[%s2252_s1 + $0x28] sm:$0xff]  }
   0x7   :  { %1435 = vmatpush3.bf16.msra.mxu0 %v1721_v4  ;;  %v1735_v18 = vld [vmem:[%s2252_s1 + $0x70] sm:$0xff]   ;;  %v1738_v21 = vld [vmem:[%s2252_s1 + $0x78] sm:$0xff]   ;;  %v1885_v22 = vld [vmem:[%s2253_s0] sm:$0xf] }
   0x8   :  { %1436 = vmatprep.subr.bf16.mxu0 %v1723_v6  ;;  %v1736_v19 = vld [vmem:[%s2252_s1 + $0x30] sm:$0xff]   ;;  %v1890_v23 = vld [vmem:[%s2253_s0 + $0x4] sm:$0xf]  ;;  %v31_v24 = vld [vmem:[%s2253_s0 + $0x8] sm:$0x1]  ;;  %v37_v26 = vshrl.u32 %v1885_v22, 16 }
   0x9   :  { %1549 = vmatpush3.bf16.msra.mxu1 %v1722_v5  ;;  %v1737_v20 = vld [vmem:[%s2252_s1 + $0xb0] sm:$0xff]   ;;  %v1739_v25 = vld [vmem:[%s2252_s1 + $0x38] sm:$0xff]   ;;  %v40_v27 = vshll.u32 %v1885_v22, 16  ;;  %v46_v28 = vshll.u32 %v1890_v23, 16  ;;  %v50_v29 = vshrl.u32 %v1890_v23, 16  ;;  %v56_v32 = vshll.u32 %v31_v24, 16  ;;  %vm1912_vm4 = vmor %vm92_vm2, %vm93_vm3 }
   0xa   :  { %1550 = vmatprep.subr.bf16.mxu1 %v1725_v8  ;;  %v84_v30 = vld [vmem:[%s2253_s0] sm:$0xe]  ;;  %v1740_v31 = vld [vmem:[%s2252_s1 + $0xb8] sm:$0xff]   ;;  %v1360_v33 = vcombine.low %v1885_v22, %v1890_v23  ;;  %v97_v36 = vrot.slane %v1890_v23, 5  ;;  %v30_v37 = vld [vmem:[%s2253_s0 + $0x10] sm:$0xf] }
   0xb   :  { %1437 = vmatpush3.bf16.msra.mxu0 %v1724_v7  ;;  %v1358_v35 = vrot.slane %v84_v30, 9  ;;  %v39_v38 = vrot.slane %v37_v26, 4  ;;  %v42_v39 = vrot.slane %v40_v27, 5  ;;  %v48_v40 = vrot.slane %v46_v28, 5  ;;  %v32_v42 = vld [vmem:[%s2253_s0 + $0x14] sm:$0x1]  ;;  %vm1933_vm5 = vmor %vm33_vm0, %vm34_vm1 }
   0xc   :  { %1438 = vmatprep.subr.bf16.mxu0 %v1726_v9  ;;  %v52_v41 = vrot.slane %v50_v29, 4  ;;  %v58_v43 = vrot.slane %v56_v32, 5  ;;  %v99_v45 = vrot.slane %v97_v36, 4  ;;  %v100_v46 = vrot.slane %v31_v24, 5  ;;  %v85_v47 = vld [vmem:[%s2253_s0 + $0xc] sm:$0xe]  ;;  %vm2082_vm11 = vmand %vm447_vm7, %vm650_vm9 }
   0xd   :  { %1551 = vmatpush3.bf16.msra.mxu1 %v1725_v8  ;;  %v98_v44 = vsel %vm1912_vm4, %v1358_v35, %v97_v36  ;;  %v43_v48 = vor.u32 %v42_v39, %v39_v38  ;;  %v1359_v50 = vrot.slane %v85_v47, 9  ;;  %v104_v51 = vrot.slane %v30_v37, 5  ;;  %v29_v52 = vld [vmem:[%s2253_s0 + $0xc] sm:$0xf]  ;;  %v451_v24 = vld [vmem:[%s2254_s3 + $0x10] sm:$0xff]  ;;  %v453_v27 = vld [vmem:[%s2254_s3 + $0x20] sm:$0xff] }
   0xe   :  { %1552 = vmatprep.subr.bf16.mxu1 %v1728_v11  ;;  %v53_v49 = vor.u32 %v52_v41, %v48_v40  ;;  %v101_v54 = vsel %vm1912_vm4, %v99_v45, %v100_v46  ;;  %v107_v55 = vrot.slane %v32_v42, 5  ;;  %v61_v56 = vshrl.u32 %v29_v52, 16  ;;  %v454_v28 = vld [vmem:[%s2254_s3 + $0x28] sm:$0xff]  ;;  %v455_v30 = vld [vmem:[%s2254_s3 + $0x30] sm:$0xff]  ;;  %v460_v38 = vld [vmem:[%s2254_s3 + $0x58] sm:$0xff] }
   0xf   :  { %1439 = vmatpush3.bf16.msra.mxu0 %v1727_v10  ;;  %v64_v57 = vshll.u32 %v29_v52, 16  ;;  %v44_v58 = vrot.slane %v43_v48, 4  ;;  %v1364_v60 = vcombine.low %v98_v44, %v101_v54  ;;  %v105_v61 = vsel %vm1912_vm4, %v1359_v50, %v104_v51  ;;  %v458_v35 = vld [vmem:[%s2254_s3 + $0x48] sm:$0xff]  ;;  %v464_v44 = vld [vmem:[%s2254_s3 + $0x78] sm:$0xff]  ;;  %vm659_vm12 = vmand %vm447_vm7, %vm658_vm10 }
  0x10   :  { %1440 = vmatprep.subr.bf16.mxu0 %v1729_v12  ;;  %v54_v59 = vrot.slane %v53_v49, 4  ;;  %v106_v62 = vrot.slane %v104_v51, 4  ;;  %v63_v63 = vrot.slane %v61_v56, 4  ;;  %v70_v1 = vshll.u32 %v30_v37, 16  ;;  %v462_v41 = vld [vmem:[%s2254_s3 + $0x68] sm:$0xff]  ;;  %vm2167_vm15 = vmor %vm650_vm9, %vm678_vm13 }
  0x11   :  { %1553 = vmatpush3.bf16.msra.mxu1 %v1728_v11  ;;  %v66_v0 = vrot.slane %v64_v57, 5  ;;  %v49_v2 = vsel %vm1933_vm5, %v44_v58, %v48_v40  ;;  %1562 = vmatprep.mubr.bf16.mxu1 %v1364_v60  ;;  %v74_v4 = vshrl.u32 %v30_v37, 16  ;;  %v80_v5 = vshll.u32 %v32_v42, 16  ;;  %v461_v40 = vld [vmem:[%s2254_s3 + $0x60] sm:$0xff]  ;;  %vm2172_vm0 = vmand %vm720_vm14, %vm658_vm10 }
  0x12   :  { %1554 = vmatprep.subr.bf16.mxu1 %v1731_v13  ;;  %v59_v3 = vsel %vm1933_vm5, %v54_v59, %v58_v43  ;;  %v108_v7 = vsel %vm1912_vm4, %v106_v62, %v107_v55  ;;  %v72_v9 = vrot.slane %v70_v1, 5  ;;  %v1773_v23 = vmov 0.0|0.0   ;;  %v463_v43 = vld [vmem:[%s2254_s3 + $0x70] sm:$0xff] }
  0x13   :  { %1441 = vmatpush3.bf16.msra.mxu0 %v1730_v14  ;;  %v1362_v6 = vcombine.low %v49_v2, %v59_v3  ;;  %v67_v8 = vor.u32 %v66_v0, %v63_v63  ;;  %v1365_v10 = vcombine.low %v105_v61, %v108_v7  ;;  %v76_v11 = vrot.slane %v74_v4, 4 }
  0x14   :  { %1442 = vmatprep.subr.bf16.mxu0 %v1732_v15  ;;  %v82_v14 = vrot.slane %v80_v5, 5  ;;  %v1978_v29 = vpack.c.bf16 %v454_v28, %v453_v27  ;;  %v2018_v42 = vpack.c.bf16 %v462_v41, %v461_v40  ;;  %v1775_v45 = vmov 0.0  }
  0x15   :  { %1555 = vmatpush3.bf16.msra.mxu1 %v1731_v13  ;;  %359 = vmatprep.mubr.bf16.mxu0 %v1362_v6  ;;  %v68_v12 = vrot.slane %v67_v8, 4  ;;  %v77_v13 = vor.u32 %v76_v11, %v72_v9  ;;  %v2030_v46 = vpack.c.bf16 %v464_v44, %v463_v43 }
  0x16   :  { %1556 = vmatprep.subr.bf16.mxu1 %v1734_v16 }
  0x17   :  { %1443 = vmatpush3.bf16.msra.mxu0 %v1733_v17  ;;  %v73_v15 = vsel %vm1933_vm5, %v68_v12, %v72_v9 }
  0x18   :  { %1444 = vmatprep.subr.bf16.mxu0 %v1735_v18  ;;  %v1361_v18 = vcombine.low %v29_v52, %v30_v37  ;;  %v459_v37 = vld [vmem:[%s2254_s3 + $0x50] sm:$0xff] }
  0x19   :  { %1557 = vmatpush3.bf16.msra.mxu1 %v1734_v16  ;;  %v78_v16 = vrot.slane %v77_v13, 4  ;;  %v2008_v39 = vpack.c.bf16 %v460_v38, %v459_v37 }
  0x1a   :  { %1558 = vmatprep.subr.bf16.mxu1 %v1737_v20 }
  0x1b   :  { %1445 = vmatpush3.bf16.msra.mxu0 %v1736_v19  ;;  %v83_v17 = vsel %vm1933_vm5, %v78_v16, %v82_v14 }
  0x1c   :  { %1446 = vmatprep.subr.bf16.mxu0 %v1738_v21  ;;  %v1363_v19 = vcombine.low %v73_v15, %v83_v17  ;;  %v450_v21 = vld [vmem:[%s2254_s3 + $0x8] sm:$0xff] }
  0x1d   :  { %1559 = vmatpush3.bf16.msra.mxu1 %v1737_v20  ;;  %v449_v20 = vld [vmem:[%s2254_s3] sm:$0xff] }
  0x1e   :  { %1560 = vmatprep.subr.bf16.mxu1 %v1740_v31  ;;  %v1957_v22 = vpack.c.bf16 %v450_v21, %v449_v20 }
  0x1f   :  { %1447 = vmatpush3.bf16.msra.mxu0 %v1739_v25  ;;  %v452_v25 = vld [vmem:[%s2254_s3 + $0x18] sm:$0xff] }
  0x20   :  { %1666 = vmatprep.subr.bf16.mxu0 %v1773_v23  ;;  %v1968_v26 = vpack.c.bf16 %v452_v25, %v451_v24 }
  0x21   :  { %1561 = vmatpush3.bf16.msra.mxu1 %v1740_v31  ;;  %v456_v31 = vld [vmem:[%s2254_s3 + $0x38] sm:$0xff] }
  0x22   :  { %360 = vmatmul.mubr.bf16.vlgmr.msra.gmra.mrb[0].mxu0 %v1360_v33  ;;  %v1988_v32 = vpack.c.bf16 %v456_v31, %v455_v30  ;;  %v457_v33 = vld [vmem:[%s2254_s3 + $0x40] sm:$0xff]  ;;  %1601 = vmatprep.subr.mxu1 %v1775_v45 }
  0x23   :  { %367 = vmatprep.mubr.bf16.mxu0 %v1363_v19  ;;  %1668 = vmatpush3.bf16.msra.mxu0 %v1957_v22  ;;  %v1998_v36 = vpack.c.bf16 %v458_v35, %v457_v33  ;;  %v2060_v31 = vld [vmem:[%s2255_s4] sm:$0xff] }
  0x24   :  { %1563 = vmatmul.mubr.bf16.vlgmr.msra.gmra.mrb[0].mxu1 %v1365_v10  ;;  %1669 = vmatprep.subr.bf16.mxu0 %v1773_v23 }
  0x25   :  { %1603 = vmatprep.mubr.msk.f32.mxu1 %vm1774_vm6, %v1775_v45  ;;  %1602 = vmatpush3.msra.mxu1 %v2060_v31 }
  0x27   :  { %1671 = vmatpush3.bf16.msra.mxu0 %v1968_v26 }
  0x28   :  { %1672 = vmatprep.subr.bf16.mxu0 %v1773_v23 }
  0x2a   :  { %368 = vmatmul.mubr.bf16.gmra.mrb[4].mxu0 %v1361_v18 }
  0x2b   :  { %1674 = vmatpush3.bf16.msra.mxu0 %v1978_v29  ;;  %1598 = vmatprep.mubr.msk.f32.mxu0 %vm1774_vm6, %v1775_v45 }
  0x2c   :  { %1675 = vmatprep.subr.bf16.mxu0 %v1773_v23 }
  0x2f   :  { %1677 = vmatpush3.bf16.msra.mxu0 %v1988_v32 }
  0x30   :  { %1678 = vmatprep.subr.bf16.mxu0 %v1773_v23 }
  0x33   :  { %1680 = vmatpush3.bf16.msra.mxu0 %v1998_v36 }
  0x34   :  { %1681 = vmatprep.subr.bf16.mxu0 %v1773_v23 }
  0x37   :  { %1683 = vmatpush3.bf16.msra.mxu0 %v2008_v39 }
  0x38   :  { %1684 = vmatprep.subr.bf16.mxu0 %v1773_v23 }
  0x3b   :  { %1686 = vmatpush3.bf16.msra.mxu0 %v2018_v42 }
  0x3c   :  { %1687 = vmatprep.subr.bf16.mxu0 %v1773_v23 }
  0x3f   :  { %1689 = vmatpush3.bf16.msra.mxu0 %v2030_v46 }
  0xf5   :  { %v1448_v47 = vpop.f32.mrb[0].mxu0 }
  0xf6   :  { %v1449_v49 = vpop.f32.mrb[1].mxu0 }
  0xf7   :  { %v1564_v48 = vpop.f32.mrb[0].mxu1  ;;  %v1450_v51 = vadd.f32 %v1449_v49, %v1448_v47  ;;  %v1451_v52 = vpop.f32.mrb[2].mxu0  ;;  %v541_v47 = vld [vmem:[%s2256_s5] sm:$0x3] }
  0xf8   :  { %v410_v50 = vpop.f32.mrb[1].mxu1  ;;  %v1452_v55 = vpop.f32.mrb[3].mxu0 }
  0xf9   :  { %v1565_v54 = vpop.f32.mrb[2].mxu1  ;;  %v1453_v57 = vadd.f32 %v1452_v55, %v1451_v52  ;;  %v2036_v58 = vadd.f32 %v1450_v51, %v410_v50  ;;  %v1743_v55 = vld [vmem:[%s2257_s2 + $0x80] sm:$0xff]  }
  0xfa   :  { %v413_v56 = vpop.f32.mrb[3].mxu1  ;;  %1606 = vmatprep.subr.bf16.mxu0 %v1743_v55 }
  0xfb   :  { %v2038_v59 = vadd.f32 %v1453_v57, %v413_v56  ;;  %v434_v2 = vmul.f32 %v2036_v58, %v2036_v58  ;;  %v1744_v56 = vld [vmem:[%s2257_s2 + $0x40] sm:$0xff]   ;;  %v1745_v57 = vld [vmem:[%s2257_s2 + $0x88] sm:$0xff]  }
  0xfc   :  { %1489 = vmatprep.subr.bf16.mxu1 %v1744_v56 }
  0xfd   :  { %v1454_v60 = vpop.f32.mrb[4].mxu0  ;;  %v435_v62 = vmul.f32 %v2038_v59, %v2038_v59  ;;  %v425_v3 = vadd.f32 %v2038_v59, %v2036_v58 }
  0xfe   :  { %v1455_v61 = vpop.f32.mrb[5].mxu0 }
  0xff   :  { %v1456_v63 = vadd.f32 %v1455_v61, %v1454_v60  ;;  %v1457_v0 = vpop.f32.mrb[6].mxu0  ;;  %v438_v6 = vadd.f32 %v435_v62, %v434_v2  ;;  %v1746_v60 = vld [vmem:[%s2257_s2] sm:$0xff]   ;;  %v660_v2 = vld [vmem:[#allocation2 + $0x8] sm:$0x1] }
 0x100   :  { %v1458_v1 = vpop.f32.mrb[7].mxu0  ;;  %v652_v62 = vld [vmem:[#allocation2] sm:$0x1] }
 0x101   :  { %v2046_v4 = vadd.f32 %v1564_v48, %v1456_v63  ;;  %v1459_v5 = vadd.f32 %v1458_v1, %v1457_v0  ;;  %v655_v63 = vld [vmem:[#allocation2 + $0xc] sm:$0x1]  ;;  %v653_v0 = vsel %vm2082_vm11, 0, %v652_v62 }
 0x102   :  { %v656_v1 = vsel %vm2082_vm11, 0, %v655_v63  ;;  %654 = vst [vmem:[#allocation2] sm:$0x1] %v653_v0 }
 0x103   :  { %v426_v7 = vadd.f32 %v425_v3, %v2046_v4  ;;  %v436_v8 = vmul.f32 %v2046_v4, %v2046_v4  ;;  %v2051_v9 = vadd.f32 %v1565_v54, %v1459_v5  ;;  %v663_v3 = vld [vmem:[#allocation2 + $0x14] sm:$0x1]  ;;  %657 = vst [vmem:[#allocation2 + $0xc] sm:$0x1] %v656_v1  ;;  %v661_v5 = vsel %vm659_vm12, 0, %v660_v2 }
 0x104   :  { %662 = vst [vmem:[#allocation2 + $0x8] sm:$0x1] %v661_v5 }
 0x105   :  { %v439_v10 = vadd.f32 %v438_v6, %v436_v8  ;;  %v427_v11 = vadd.f32 %v426_v7, %v2051_v9  ;;  %v437_v12 = vmul.f32 %v2051_v9, %v2051_v9  ;;  %v664_v6 = vsel %vm659_vm12, 0, %v663_v3  ;;  %v1747_v7 = vld [vmem:[%s2257_s2 + $0x48] sm:$0xff]   ;;  %v1748_v8 = vld [vmem:[%s2257_s2 + $0x90] sm:$0xff]  }
 0x106   :  { %665 = vst [vmem:[#allocation2 + $0x14] sm:$0x1] %v664_v6 }
 0x107   :  { %v428_v13 = vrot.slane %v427_v11, 4  ;;  %v440_v14 = vadd.f32 %v439_v10, %v437_v12  ;;  %v1749_v10 = vld [vmem:[%s2257_s2 + $0x8] sm:$0xff]   ;;  %v1751_v12 = vld [vmem:[%s2257_s2 + $0x98] sm:$0xff]  }
 0x109   :  { %v429_v15 = vadd.f32 %v428_v13, %v427_v11  ;;  %v441_v16 = vrot.slane %v440_v14, 4  ;;  %v1750_v11 = vld [vmem:[%s2257_s2 + $0x50] sm:$0xff]  }
 0x10a   :  { %v1752_v13 = vld [vmem:[%s2257_s2 + $0x10] sm:$0xff]  }
 0x10b   :  { %v430_v17 = vrot.slane %v429_v15, 2  ;;  %v442_v18 = vadd.f32 %v441_v16, %v440_v14  ;;  %v1753_v14 = vld [vmem:[%s2257_s2 + $0x58] sm:$0xff]  }
 0x10c   :  { %v1755_v16 = vld [vmem:[%s2257_s2 + $0x18] sm:$0xff]  }
 0x10d   :  { %v431_v19 = vadd.f32 %v430_v17, %v429_v15  ;;  %v443_v20 = vrot.slane %v442_v18, 2  ;;  %v1754_v15 = vld [vmem:[%s2257_s2 + $0xa0] sm:$0xff]  }
 0x10e   :  { %v1756_v17 = vld [vmem:[%s2257_s2 + $0x60] sm:$0xff]  }
 0x10f   :  { %v432_v21 = vrot.slane %v431_v19, 1  ;;  %v444_v24 = vadd.f32 %v443_v20, %v442_v18  ;;  %v1757_v18 = vld [vmem:[%s2257_s2 + $0xa8] sm:$0xff]  }
 0x110   :  { %v1759_v20 = vld [vmem:[%s2257_s2 + $0x68] sm:$0xff]  }
 0x111   :  { %v445_v25 = vrot.slane %v444_v24, 1  ;;  %v433_v27 = vadd.f32 %v432_v21, %v431_v19  ;;  %v1758_v19 = vld [vmem:[%s2257_s2 + $0x20] sm:$0xff]   ;;  %v1760_v21 = vld [vmem:[%s2257_s2 + $0xb0] sm:$0xff]  }
 0x113   :  { %v446_v28 = vadd.f32 %v445_v25, %v444_v24  ;;  %v1761_v24 = vld [vmem:[%s2257_s2 + $0x28] sm:$0xff]   ;;  %v1762_v25 = vld [vmem:[%s2257_s2 + $0x70] sm:$0xff]  }
 0x115   :  { %v448_v30 = vsel %vm447_vm7, %v433_v27, %v446_v28  ;;  %v1763_v27 = vld [vmem:[%s2257_s2 + $0xb8] sm:$0xff]   ;;  %v1764_v28 = vld [vmem:[%s2257_s2 + $0x30] sm:$0xff]  }
 0x116   :  { %1599 = vmatmul.mubr.f32.vlgmr.msra.gmra.mrb[8].mxu0 %v448_v30  ;;  %v1765_v30 = vld [vmem:[%s2257_s2 + $0x78] sm:$0xff]  }
 0x117   :  { %1607 = vmatpush3.bf16.msra.mxu0 %v1743_v55 }
 0x118   :  { %1608 = vmatprep.subr.bf16.mxu0 %v1745_v57 }
 0x11b   :  { %1609 = vmatpush3.bf16.msra.mxu0 %v1745_v57 }
 0x11c   :  { %1610 = vmatprep.subr.bf16.mxu0 %v1748_v8 }
 0x11f   :  { %1611 = vmatpush3.bf16.msra.mxu0 %v1748_v8 }
 0x120   :  { %1612 = vmatprep.subr.bf16.mxu0 %v1751_v12 }
 0x123   :  { %1613 = vmatpush3.bf16.msra.mxu0 %v1751_v12 }
 0x124   :  { %1614 = vmatprep.subr.bf16.mxu0 %v1754_v15 }
 0x127   :  { %1615 = vmatpush3.bf16.msra.mxu0 %v1754_v15 }
 0x128   :  { %1616 = vmatprep.subr.bf16.mxu0 %v1757_v18 }
 0x12b   :  { %1617 = vmatpush3.bf16.msra.mxu0 %v1757_v18 }
 0x12c   :  { %1618 = vmatprep.subr.bf16.mxu0 %v1760_v21 }
 0x12f   :  { %1619 = vmatpush3.bf16.msra.mxu0 %v1760_v21 }
 0x130   :  { %1620 = vmatprep.subr.bf16.mxu0 %v1763_v27 }
 0x133   :  { %1621 = vmatpush3.bf16.msra.mxu0 %v1763_v27 }
 0x134   :  { %1661 = vmatprep.subr.mxu0 %v1775_v45 }
 0x1e9   :  { %v531_v33 = vpop.f32.mrb[8].mxu0 }
 0x1ea   :  { %v535_v35 = vmul.f32 0.001953125, %v531_v33  ;;  %v1600_v37 = vpop.f32.mrb[9].mxu0  ;;  %v1766_v33 = vld [vmem:[%s2257_s2 + $0x38] sm:$0xff]  }
 0x1ec   :  { %v536_v38 = vmul.f32 %v535_v35, %v535_v35 }
 0x1ee   :  { %v538_v40 = vrot.slane %v536_v38, 7 }
 0x1f0   :  { %v540_v41 = vsub.f32 %v535_v35, %v538_v40 }
 0x1f2   :  { %v542_v43 = vadd.f32 1e-05, %v540_v41 }
 0x1f4   :  { %1769 = vrsqrt.f32 %v542_v43 }
 0x1fe   :  { %v1770_v44 = vpop.eup %1769 }
 0x1ff   :  { %v545_v48 = vrot.slane %v1770_v44, 1 }
 0x201   :  { %v547_v49 = vmul.f32 %v545_v48, %v541_v47 }
 0x203   :  { %v548_v50 = vmul.f32 %v547_v49, %v535_v35  ;;  %v629_v35 = vlaneseq }
 0x205   :  { %v550_v51 = vrot.slane %v548_v50, 7  ;;  %v2154_v37 = vshrl.u32 %v629_v35, 7 }
 0x207   :  { %v552_v52 = vsub.f32 %v541_v47, %v550_v51  ;;  %v631_v38 = vsub.s32 0, %v2154_v37  ;;  %v639_v40 = vsub.s32 1, %v2154_v37 }
 0x209   :  { %v553_v54 = vsel %vm447_vm7, %v547_v49, %v552_v52 }
 0x20a   :  { %1604 = vmatmul.mubr.msk.f32.vlgmr.msra.gmra.mrb[4].mxu1 %vm555_vm8, %v553_v54 }
 0x20b   :  { %1490 = vmatpush3.bf16.msra.mxu1 %v1746_v60 }
 0x20c   :  { %1491 = vmatprep.subr.bf16.mxu1 %v1747_v7 }
 0x20f   :  { %1492 = vmatpush3.bf16.msra.mxu1 %v1749_v10 }
 0x210   :  { %1493 = vmatprep.subr.bf16.mxu1 %v1750_v11  ;;  %v722_v11 = vld [vmem:[#allocation2] sm:$0xf] }
 0x213   :  { %1494 = vmatpush3.bf16.msra.mxu1 %v1752_v13 }
 0x214   :  { %1495 = vmatprep.subr.bf16.mxu1 %v1753_v14 }
 0x217   :  { %1496 = vmatpush3.bf16.msra.mxu1 %v1755_v16 }
 0x218   :  { %1497 = vmatprep.subr.bf16.mxu1 %v1756_v17  ;;  %v726_v17 = vld [vmem:[#allocation2 + $0x8] sm:$0x1] }
 0x21b   :  { %1498 = vmatpush3.bf16.msra.mxu1 %v1758_v19 }
 0x21c   :  { %1499 = vmatprep.subr.bf16.mxu1 %v1759_v20 }
 0x21f   :  { %1500 = vmatpush3.bf16.msra.mxu1 %v1761_v24  ;;  %v729_v24 = vld [vmem:[#allocation2 + $0xc] sm:$0xf] }
 0x220   :  { %1501 = vmatprep.subr.bf16.mxu1 %v1762_v25  ;;  %v733_v25 = vld [vmem:[#allocation2 + $0x14] sm:$0x1] }
 0x223   :  { %1502 = vmatpush3.bf16.msra.mxu1 %v1764_v28 }
 0x224   :  { %1503 = vmatprep.subr.bf16.mxu1 %v1765_v30 }
 0x227   :  { %1504 = vmatpush3.bf16.msra.mxu1 %v1766_v33 }
 0x228   :  { %1690 = vmatprep.subr.bf16.mxu1 %v1773_v23 }
 0x2dd   :  { %v625_v41 = vpop.f32.mrb[4].mxu1 }
 0x2de   :  { %v632_v43 = vrot.slane %v625_v41, %v631_v38  ;;  %v1605_v44 = vpop.f32.mrb[5].mxu1  ;;  %v640_v47 = vrot.slane %v625_v41, %v639_v40 }
 0x2e0   :  { %v633_v48 = vmul.f32 %v632_v43, %v2036_v58  ;;  %v634_v49 = vmul.f32 %v632_v43, %v2038_v59  ;;  %v635_v50 = vmul.f32 %v632_v43, %v2046_v4  ;;  %v636_v51 = vmul.f32 %v632_v43, %v2051_v9 }
 0x2e2   :  { %v641_v52 = vadd.f32 %v640_v47, %v633_v48  ;;  %v642_v54 = vadd.f32 %v640_v47, %v634_v49  ;;  %v643_v55 = vadd.f32 %v640_v47, %v635_v50  ;;  %v644_v56 = vadd.f32 %v640_v47, %v636_v51 }
 0x2e4   :  { %v645_v57 = vmax.f32 %v641_v52, 0.0  ;;  %v646_v60 = vmax.f32 %v642_v54, 0.0  ;;  %v647_v62 = vmax.f32 %v643_v55, 0.0  ;;  %v648_v63 = vmax.f32 %v644_v56, 0.0 }
 0x2e6   :  { %v1428_v0 = vpack.c.bf16 %v645_v57, %v645_v57  ;;  %v1429_v1 = vpack.c.bf16 %v646_v60, %v646_v60  ;;  %v1430_v2 = vpack.c.bf16 %v647_v62, %v647_v62  ;;  %v1431_v3 = vpack.c.bf16 %v648_v63, %v648_v63 }
 0x2e8   :  { %v681_v58 = vshrl.u32 %v1428_v0, 16  ;;  %v689_v5 = vshrl.u32 %v1429_v1, 16  ;;  %v698_v59 = vshrl.u32 %v1430_v2, 16  ;;  %v706_v4 = vshrl.u32 %v1431_v3, 16 }
 0x2e9   :  { %v684_v7 = vshll.u32 %v1428_v0, 16  ;;  %v692_v10 = vshll.u32 %v1429_v1, 16  ;;  %v701_v13 = vshll.u32 %v1430_v2, 16  ;;  %v709_v15 = vshll.u32 %v1431_v3, 16 }
 0x2ea   :  { %v683_v6 = vrot.slane %v681_v58, 7  ;;  %v691_v8 = vrot.slane %v689_v5, 7  ;;  %v700_v12 = vrot.slane %v698_v59, 7  ;;  %v708_v14 = vrot.slane %v706_v4, 7 }
 0x2ec   :  { %v686_v18 = vor.u32 %v684_v7, %v683_v6  ;;  %v687_v19 = vrot.slane %v683_v6, 4  ;;  %v694_v20 = vor.u32 %v692_v10, %v691_v8  ;;  %v696_v21 = vrot.slane %v691_v8, 4 }
 0x2ed   :  { %v703_v27 = vor.u32 %v701_v13, %v700_v12  ;;  %v704_v28 = vrot.slane %v700_v12, 4  ;;  %v711_v30 = vor.u32 %v709_v15, %v708_v14  ;;  %v713_v33 = vrot.slane %v708_v14, 4 }
 0x2ee   :  { %v695_v35 = vsel %vm2167_vm15, %v687_v19, %v694_v20  ;;  %v723_v41 = vsel %vm2172_vm0, %v686_v18, %v722_v11  ;;  %v727_v43 = vsel %vm2082_vm11, %v696_v21, %v726_v17 }
 0x2ef   :  { %v712_v44 = vsel %vm2167_vm15, %v704_v28, %v711_v30  ;;  %724 = vst [vmem:[#allocation2] sm:$0xf] %v723_v41  ;;  %725 = vst [vmem:[#allocation2 + $0x4] sm:$0xf] %v695_v35  ;;  %v730_v47 = vsel %vm2172_vm0, %v703_v27, %v729_v24  ;;  %v734_v48 = vsel %vm2082_vm11, %v713_v33, %v733_v25 }
 0x2f0   :  { %728 = vst [vmem:[#allocation2 + $0x8] sm:$0x1] %v727_v43  ;;  %731 = vst [vmem:[#allocation2 + $0xc] sm:$0xf] %v730_v47 }
 0x2f1   :  { %732 = vst [vmem:[#allocation2 + $0x10] sm:$0xf] %v712_v44  ;;  %735 = vst [vmem:[#allocation2 + $0x14] sm:$0x1] %v734_v48 }
 0x2f6   :  { %v737_v49 = vld [vmem:[#allocation2 + $0x4] sm:$0xf]  ;;  %v790_v51 = vld [vmem:[#allocation2] sm:$0xe] }
 0x2f7   :  { %v740_v50 = vld [vmem:[#allocation2 + $0x8] sm:$0x1]  ;;  %v1395_v52 = vrot.slane %v790_v51, 9  ;;  %v800_v54 = vrot.slane %v737_v49, 5  ;;  %v752_v57 = vshll.u32 %v737_v49, 16  ;;  %v756_v0 = vshrl.u32 %v737_v49, 16 }
 0x2f8   :  { %v803_v55 = vrot.slane %v740_v50, 5  ;;  %v2188_v56 = vld [vmem:[#allocation2 + $0x10] sm:$0xf]  ;;  %v741_v60 = vld [vmem:[#allocation2 + $0x14] sm:$0x1]  ;;  %v762_v10 = vshll.u32 %v740_v50, 16 }
 0x2f9   :  { %v791_v62 = vld [vmem:[#allocation2 + $0xc] sm:$0xe]  ;;  %v807_v63 = vrot.slane %v2188_v56, 5  ;;  %v801_v61 = vsel %vm1912_vm4, %v1395_v52, %v800_v54  ;;  %v802_v1 = vrot.slane %v800_v54, 4  ;;  %v810_v3 = vrot.slane %v741_v60, 5 }
 0x2fa   :  { %v1396_v2 = vrot.slane %v791_v62, 9  ;;  %v736_v58 = vld [vmem:[#allocation2] sm:$0xf]  ;;  %v754_v9 = vrot.slane %v752_v57, 5  ;;  %v758_v8 = vrot.slane %v756_v0, 4  ;;  %v776_v21 = vshll.u32 %v2188_v56, 16 }
 0x2fb   :  { %v809_v5 = vrot.slane %v807_v63, 4  ;;  %v743_v59 = vshrl.u32 %v736_v58, 16  ;;  %v746_v4 = vshll.u32 %v736_v58, 16  ;;  %v804_v6 = vsel %vm1912_vm4, %v802_v1, %v803_v55  ;;  %v738_v11 = vld [vmem:[#allocation2 + $0xc] sm:$0xf] }
 0x2fc   :  { %v808_v7 = vsel %vm1912_vm4, %v1396_v2, %v807_v63  ;;  %v1401_v12 = vcombine.low %v801_v61, %v804_v6  ;;  %v759_v17 = vor.u32 %v758_v8, %v754_v9  ;;  %v767_v19 = vshrl.u32 %v738_v11, 16 }
 0x2fd   :  { %v811_v13 = vsel %vm1912_vm4, %v809_v5, %v810_v3  ;;  %v745_v14 = vrot.slane %v743_v59, 4  ;;  %v748_v15 = vrot.slane %v746_v4, 5  ;;  %v770_v20 = vshll.u32 %v738_v11, 16 }
 0x2fe   :  { %v1402_v16 = vcombine.low %v808_v7, %v811_v13  ;;  %1622 = vmatprep.mubr.bf16.mxu0 %v1401_v12  ;;  %v760_v24 = vrot.slane %v759_v17, 4  ;;  %v764_v25 = vrot.slane %v762_v10, 5  ;;  %v780_v27 = vshrl.u32 %v2188_v56, 16 }
 0x2ff   :  { %v749_v18 = vor.u32 %v748_v15, %v745_v14  ;;  %v769_v30 = vrot.slane %v767_v19, 4  ;;  %v772_v33 = vrot.slane %v770_v20, 5  ;;  %v778_v34 = vrot.slane %v776_v21, 5 }
 0x300   :  { %1623 = vmatmul.mubr.bf16.vlgmr.msra.gmra.mrb[12].mxu0 %v1402_v16  ;;  %v765_v35 = vsel %vm1933_vm5, %v760_v24, %v764_v25  ;;  %v782_v41 = vrot.slane %v780_v27, 4  ;;  %v786_v43 = vshll.u32 %v741_v60, 16  ;;  %v1397_v51 = vcombine.low %v736_v58, %v737_v49 }
 0x301   :  { %v750_v28 = vrot.slane %v749_v18, 4  ;;  %1662 = vmatpush3.msra.mxu0 %v2060_v31  ;;  %1663 = vmatprep.mubr.msk.f32.mxu0 %vm1774_vm6, %v1775_v45  ;;  %v773_v47 = vor.u32 %v772_v33, %v769_v30  ;;  %v1398_v49 = vcombine.low %v738_v11, %v2188_v56 }
 0x302   :  { %v783_v50 = vor.u32 %v782_v41, %v778_v34  ;;  %v788_v55 = vrot.slane %v786_v43, 5 }
 0x303   :  { %v755_v44 = vsel %vm1933_vm5, %v750_v28, %v754_v9  ;;  %v774_v52 = vrot.slane %v773_v47, 4 }
 0x304   :  { %v1399_v48 = vcombine.low %v755_v44, %v765_v35  ;;  %v784_v54 = vrot.slane %v783_v50, 4 }
 0x305   :  { %v779_v31 = vsel %vm1933_vm5, %v774_v52, %v778_v34 }
 0x306   :  { %1062 = vmatprep.mubr.bf16.mxu1 %v1399_v48  ;;  %v789_v57 = vsel %vm1933_vm5, %v784_v54, %v788_v55  ;;  %v1243_v48 = vld [vmem:[%s2258_s6] sm:$0x3] }
 0x307   :  { %1063 = vmatmul.mubr.bf16.vlgmr.msra.gmra.mrb[8].mxu1 %v1397_v51  ;;  %v1400_v60 = vcombine.low %v779_v31, %v789_v57 }
 0x308   :  { %1692 = vmatpush3.bf16.msra.mxu1 %v1957_v22 }
 0x309   :  { %1693 = vmatprep.subr.bf16.mxu1 %v1773_v23  ;;  %1070 = vmatprep.mubr.bf16.mxu1 %v1400_v60 }
 0x30c   :  { %1695 = vmatpush3.bf16.msra.mxu1 %v1968_v26 }
 0x30d   :  { %1696 = vmatprep.subr.bf16.mxu1 %v1773_v23 }
 0x30f   :  { %1071 = vmatmul.mubr.bf16.gmra.mrb[12].mxu1 %v1398_v49 }
 0x310   :  { %1698 = vmatpush3.bf16.msra.mxu1 %v1978_v29  ;;  %1658 = vmatprep.mubr.msk.f32.mxu1 %vm1774_vm6, %v1775_v45 }
 0x311   :  { %1699 = vmatprep.subr.bf16.mxu1 %v1773_v23 }
 0x314   :  { %1701 = vmatpush3.bf16.msra.mxu1 %v1988_v32 }
 0x315   :  { %1702 = vmatprep.subr.bf16.mxu1 %v1773_v23 }
 0x318   :  { %1704 = vmatpush3.bf16.msra.mxu1 %v1998_v36 }
 0x319   :  { %1705 = vmatprep.subr.bf16.mxu1 %v1773_v23 }
 0x31c   :  { %1707 = vmatpush3.bf16.msra.mxu1 %v2008_v39 }
 0x31d   :  { %1708 = vmatprep.subr.bf16.mxu1 %v1773_v23 }
 0x320   :  { %1710 = vmatpush3.bf16.msra.mxu1 %v2018_v42 }
 0x321   :  { %1711 = vmatprep.subr.bf16.mxu1 %v1773_v23 }
 0x324   :  { %1713 = vmatpush3.bf16.msra.mxu1 %v2030_v46 }
 0x3d3   :  { %v1624_v53 = vpop.f32.mrb[12].mxu0 }
 0x3d4   :  { %v1113_v22 = vpop.f32.mrb[13].mxu0 }
 0x3d5   :  { %v1625_v26 = vpop.f32.mrb[14].mxu0 }
 0x3d6   :  { %v1116_v29 = vpop.f32.mrb[15].mxu0 }
 0x3da   :  { %v1505_v32 = vpop.f32.mrb[8].mxu1 }
 0x3db   :  { %v1506_v45 = vpop.f32.mrb[9].mxu1 }
 0x3dc   :  { %v1507_v56 = vadd.f32 %v1506_v45, %v1505_v32  ;;  %v1508_v36 = vpop.f32.mrb[10].mxu1 }
 0x3dd   :  { %v1509_v62 = vpop.f32.mrb[11].mxu1 }
 0x3de   :  { %v1114_v63 = vadd.f32 %v1507_v56, %v1113_v22  ;;  %v1510_v0 = vadd.f32 %v1509_v62, %v1508_v36 }
 0x3e0   :  { %v1117_v39 = vadd.f32 %v1510_v0, %v1116_v29  ;;  %v1137_v58 = vmul.f32 %v1114_v63, %v1114_v63 }
 0x3e2   :  { %v1511_v61 = vpop.f32.mrb[12].mxu1  ;;  %v1138_v2 = vmul.f32 %v1117_v39, %v1117_v39  ;;  %v1128_v46 = vadd.f32 %v1117_v39, %v1114_v63 }
 0x3e3   :  { %v1512_v1 = vpop.f32.mrb[13].mxu1 }
 0x3e4   :  { %v1513_v42 = vadd.f32 %v1512_v1, %v1511_v61  ;;  %v1514_v3 = vpop.f32.mrb[14].mxu1  ;;  %v1141_v4 = vadd.f32 %v1138_v2, %v1137_v58 }
 0x3e5   :  { %v1515_v23 = vpop.f32.mrb[15].mxu1 }
 0x3e6   :  { %v1122_v5 = vadd.f32 %v1624_v53, %v1513_v42  ;;  %v1516_v59 = vadd.f32 %v1515_v23, %v1514_v3 }
 0x3e8   :  { %v1129_v9 = vadd.f32 %v1128_v46, %v1122_v5  ;;  %v1139_v6 = vmul.f32 %v1122_v5, %v1122_v5  ;;  %v1125_v7 = vadd.f32 %v1625_v26, %v1516_v59 }
 0x3ea   :  { %v1142_v8 = vadd.f32 %v1141_v4, %v1139_v6  ;;  %v1130_v10 = vadd.f32 %v1129_v9, %v1125_v7  ;;  %v1140_v11 = vmul.f32 %v1125_v7, %v1125_v7 }
 0x3ec   :  { %v1131_v12 = vrot.slane %v1130_v10, 4  ;;  %v1143_v13 = vadd.f32 %v1142_v8, %v1140_v11 }
 0x3ee   :  { %v1132_v14 = vadd.f32 %v1131_v12, %v1130_v10  ;;  %v1144_v15 = vrot.slane %v1143_v13, 4 }
 0x3f0   :  { %v1133_v16 = vrot.slane %v1132_v14, 2  ;;  %v1145_v17 = vadd.f32 %v1144_v15, %v1143_v13 }
 0x3f2   :  { %v1134_v18 = vadd.f32 %v1133_v16, %v1132_v14  ;;  %v1146_v19 = vrot.slane %v1145_v17, 2 }
 0x3f4   :  { %v1135_v20 = vrot.slane %v1134_v18, 1  ;;  %v1147_v21 = vadd.f32 %v1146_v19, %v1145_v17 }
 0x3f6   :  { %v1148_v24 = vrot.slane %v1147_v21, 1  ;;  %v1136_v25 = vadd.f32 %v1135_v20, %v1134_v18 }
 0x3f8   :  { %v1149_v27 = vadd.f32 %v1148_v24, %v1147_v21 }
 0x3fa   :  { %v1150_v28 = vsel %vm447_vm7, %v1136_v25, %v1149_v27 }
 0x3fb   :  { %1659 = vmatmul.mubr.f32.vlgmr.msra.gmra.mrb[6].mxu1 %v1150_v28 }
 0x4ce   :  { %v1233_v30 = vpop.f32.mrb[6].mxu1 }
 0x4cf   :  { %v1237_v33 = vmul.f32 0.001953125, %v1233_v30  ;;  %v1660_v34 = vpop.f32.mrb[7].mxu1 }
 0x4d1   :  { %v1238_v35 = vmul.f32 %v1237_v33, %v1237_v33 }
 0x4d3   :  { %v1240_v41 = vrot.slane %v1238_v35, 7 }
 0x4d5   :  { %v1242_v43 = vsub.f32 %v1237_v33, %v1240_v41 }
 0x4d7   :  { %v1244_v44 = vadd.f32 1e-05, %v1242_v43 }
 0x4d9   :  { %1771 = vrsqrt.f32 %v1244_v44 }
 0x4e3   :  { %v1772_v47 = vpop.eup %1771 }
 0x4e4   :  { %v1247_v50 = vrot.slane %v1772_v47, 1 }
 0x4e6   :  { %v1249_v51 = vmul.f32 %v1247_v50, %v1243_v48 }
 0x4e8   :  { %v1250_v52 = vmul.f32 %v1249_v51, %v1237_v33 }
 0x4ea   :  { %v1252_v54 = vrot.slane %v1250_v52, 7 }
 0x4ec   :  { %v1254_v55 = vsub.f32 %v1243_v48, %v1252_v54 }
 0x4ee   :  { %v1255_v31 = vsel %vm447_vm7, %v1249_v51, %v1254_v55 }
 0x4ef   :  { %1664 = vmatmul.mubr.msk.f32.vlgmr.msra.gmra.mrb[10].mxu0 %vm555_vm8, %v1255_v31 }
 0x5c2   :  { %v1326_v57 = vpop.f32.mrb[10].mxu0 }
 0x5c3   :  { %v1333_v60 = vrot.slane %v1326_v57, %v631_v38  ;;  %v1665_v49 = vpop.f32.mrb[11].mxu0  ;;  %v1341_v53 = vrot.slane %v1326_v57, %v639_v40 }
 0x5c5   :  { %v1334_v22 = vmul.f32 %v1333_v60, %v1114_v63  ;;  %v1335_v26 = vmul.f32 %v1333_v60, %v1117_v39  ;;  %v1336_v29 = vmul.f32 %v1333_v60, %v1122_v5  ;;  %v1337_v32 = vmul.f32 %v1333_v60, %v1125_v7 }
 0x5c7   :  { %v1342_v45 = vadd.f32 %v1341_v53, %v1334_v22  ;;  %v1343_v56 = vadd.f32 %v1341_v53, %v1335_v26  ;;  %v1344_v36 = vadd.f32 %v1341_v53, %v1336_v29  ;;  %v1345_v62 = vadd.f32 %v1341_v53, %v1337_v32 }
 0x5c9   :  { %v1346_v0 = vmax.f32 %v1342_v45, 0.0  ;;  %v1347_v61 = vmax.f32 %v1343_v56, 0.0  ;;  %v1348_v1 = vmax.f32 %v1344_v36, 0.0  ;;  %v1349_v2 = vmax.f32 %v1345_v62, 0.0 }
 0x5cb   :  { %1350 = vst [vmem:[%s2259_s7] sm:$0xff] %v1346_v0  ;;  %1351 = vst [vmem:[%s2259_s7 + $0x8] sm:$0xff] %v1347_v61 }
 0x5cc   :  { %1352 = vst [vmem:[%s2259_s7 + $0x10] sm:$0xff] %v1348_v1  ;;  %1353 = vst [vmem:[%s2259_s7 + $0x18] sm:$0xff] %v1349_v2 }

</bundles_post_ra>
